<compile_context>
chip_gen: v7x
topology: tpu7x:2x2x1
jax: 0.10.0
libtpu: 0.0.40
codegen_flags: <defaults>
</compile_context>

<pallas_src>
import jax
import jax.numpy as jnp
from jax import lax
from jax.experimental import pallas as pl
from jax.experimental.pallas import tpu as pltpu

N_SED = 13          # SED channels
DOA_END = 52        # dist channels start here; F - 52 must equal 13
FEAT = 65           # 13 SED + 39 DOA + 13 dist
LOSS_W = (1.0, 0.1)
NUM_SPLITS = 2      # leading "parallel" grid axis (v7x: one slice per TensorCore)


def _round_up(x, m):
    return ((x + m - 1) // m) * m


def _make_kernel(tile_rows, tiles_per_core, n_rows, ragged):
    """n_rows / tiles / raggedness are trace-time Python constants."""

    def kernel(pred_ref, targ_ref, sed_part_ref, dist_part_ref,
               acc_sed_ref, acc_dist_ref):
        c = pl.program_id(0)          # core / row-split index   ("parallel")
        i = pl.program_id(1)          # tile index within split  ("arbitrary")

        @pl.when(i == 0)
        def _init():
            acc_sed_ref[...] = jnp.zeros_like(acc_sed_ref)
            acc_dist_ref[...] = jnp.zeros_like(acc_dist_ref)

        pred = pred_ref[...].astype(jnp.float32)   # (tile_rows, 65)
        targ = targ_ref[...].astype(jnp.float32)

        so = pred[:, :N_SED]        # sed_out     (tile_rows, 13)
        sl = targ[:, :N_SED]        # sed_label
        do = pred[:, DOA_END:]      # dist_out
        dl = targ[:, DOA_END:]      # dist_label

        # BCE (matching torch.nn.BCELoss: log terms clamped at -100), fused as
        #   -(y*log x + (1-y)*log(1-x)) = -(y*(log_x - log_1mx) + log_1mx)
        log_x = jnp.maximum(jnp.log(so), -100.0)
        log_1mx = jnp.maximum(jnp.log1p(-so), -100.0)
        bce = -(sl * (log_x - log_1mx) + log_1mx)

        # MSE term: (dist_out * sed_label - dist_label)^2
        diff = do * sl - dl
        sq = diff * diff

        if ragged:
            # Mask rows past the true row count (last tile reads unspecified
            # padding; where-select drops any NaN/Inf produced from it).
            row0 = (c * tiles_per_core + i) * tile_rows
            rid = lax.broadcasted_iota(jnp.int32, (tile_rows, N_SED), 0)
            valid = (rid + row0) < n_rows
            bce = jnp.where(valid, bce, 0.0)
            sq = jnp.where(valid, sq, 0.0)

        # Pure elementwise accumulation (VALU only) — no per-step reduce.
        acc_sed_ref[...] += bce
        acc_dist_ref[...] += sq

        # Single XLU collapse + output write, only on this split's last step.
        @pl.when(i == tiles_per_core - 1)
        def _finalize():
            sed_sum = jnp.sum(acc_sed_ref[...], keepdims=True)[0, 0]
            dist_sum = jnp.sum(acc_dist_ref[...], keepdims=True)[0, 0]
            sed_part_ref[...] = jnp.broadcast_to(sed_sum, sed_part_ref.shape)
            dist_part_ref[...] = jnp.broadcast_to(dist_sum, dist_part_ref.shape)

    return kernel


def sed_dist_loss_2024_mse(output, target, loss_weight=LOSS_W):
    """Returns (loss_sed, loss_dist, loss) as float32 scalars."""
    assert output.shape == target.shape
    B, T, F = output.shape
    assert F == FEAT and F - DOA_END == N_SED, "expects 13 SED + 39 DOA + 13 dist"

    rows = B * T
    n_true = rows * N_SED

    # Free reshapes (contiguous): stream the raw arrays, no slice/pad copies.
    pred = jnp.reshape(output, (rows, F))
    targ = jnp.reshape(target, (rows, F))

    # Tile-size budget: ~6 MiB (f32) / ~8 MiB (bf16) per-step VMEM — fits the
    # 16 MiB v5e scoped default; v6e/v7x have headroom to raise this further.
    itemsize = max(jnp.dtype(output.dtype).itemsize, jnp.dtype(target.dtype).itemsize)
    max_tile_rows = 2048 if itemsize >= 4 else 4096

    # cdiv-first tiling: pad waste is < 8 rows per tile.
    tiles_total = NUM_SPLITS * max(1, pl.cdiv(pl.cdiv(rows, NUM_SPLITS), max_tile_rows))
    tile_rows = _round_up(pl.cdiv(rows, tiles_total), 8)
    tiles_per_core = tiles_total // NUM_SPLITS
    covered = tiles_total * tile_rows
    ragged = covered != rows

    kernel = _make_kernel(tile_rows, tiles_per_core, rows, ragged)

    in_spec = pl.BlockSpec((tile_rows, F), lambda c, i: (c * tiles_per_core + i, 0))
    out_spec = pl.BlockSpec((1, 8, 128), lambda c, i: (c, 0, 0))
    part_shape = jax.ShapeDtypeStruct((NUM_SPLITS, 8, 128), jnp.float32)

    sed_part, dist_part = pl.pallas_call(
        kernel,
        out_shape=(part_shape, part_shape),
        grid=(NUM_SPLITS, tiles_per_core),
        in_specs=[in_spec, in_spec],
        out_specs=(out_spec, out_spec),
        scratch_shapes=[pltpu.VMEM((tile_rows, N_SED), jnp.float32),
                        pltpu.VMEM((tile_rows, N_SED), jnp.float32)],
        compiler_params=pltpu.CompilerParams(
            dimension_semantics=("parallel", "arbitrary")),
    )(pred, targ)

    # Combine the per-split partial sums; mean + weighting in the wrapper.
    inv_n = 1.0 / float(n_true)
    loss_sed = jnp.sum(sed_part[:, 0, 0]) * inv_n
    loss_dist = jnp.sum(dist_part[:, 0, 0]) * inv_n
    loss = float(loss_weight[0]) * loss_sed + float(loss_weight[1]) * loss_dist
    return loss_sed, loss_dist, loss


def _reference(output, target, loss_weight=LOSS_W):
    sed_out, sed_lab = output[:, :, :N_SED], target[:, :, :N_SED]
    dist_out, dist_lab = output[:, :, DOA_END:], target[:, :, DOA_END:]
    bce = -(sed_lab * jnp.maximum(jnp.log(sed_out), -100.0)
            + (1.0 - sed_lab) * jnp.maximum(jnp.log(1.0 - sed_out), -100.0))
    loss_sed = jnp.mean(bce)
    loss_dist = jnp.mean((dist_out * sed_lab - dist_lab) ** 2)
    return loss_sed, loss_dist, loss_weight[0] * loss_sed + loss_weight[1] * loss_dist


if __name__ == "__main__":
    def run_case(B, T, key):
        k_out, k_sed, k_doa, k_dist = jax.random.split(key, 4)
        raw = jax.random.normal(k_out, (B, T, FEAT), dtype=jnp.float32)
        sed_prob = jax.nn.sigmoid(raw[:, :, :N_SED])       # BCE needs probs in (0,1)
        output = jnp.concatenate([sed_prob, raw[:, :, N_SED:]], axis=-1)

        sed_label = (jax.random.uniform(k_sed, (B, T, N_SED)) > 0.5).astype(jnp.float32)
        doa_label = jax.random.normal(k_doa, (B, T, DOA_END - N_SED), dtype=jnp.float32)
        dist_label = jax.random.uniform(k_dist, (B, T, FEAT - DOA_END)) * 5.0
        target = jnp.concatenate([sed_label, doa_label, dist_label], axis=-1)

        got = sed_dist_loss_2024_mse(output, target)
        jax.block_until_ready(got)
        want = _reference(output, target)
        for g, w in zip(got, want):
            assert jnp.allclose(g, w, rtol=1e-5, atol=1e-5), (g, w)

    key = jax.random.PRNGKey(0)
    k1, k2 = jax.random.split(key)
    run_case(2, 8, k1)   # rows = 16: exact tiling, both grid splits used
    run_case(3, 7, k2)   # rows = 21: ragged last tile exercises the row mask
    print("KERNEL_OK")
</pallas_src>

<mosaic_0001>
module attributes {stable_mosaic.version = 11 : i64} {
  func.func @kernel(%arg0: i32, %arg1: i32, %arg2: memref<8x65xf32, #tpu.memory_space<vmem>>, %arg3: memref<8x65xf32, #tpu.memory_space<vmem>>, %arg4: memref<1x8x128xf32, #tpu.memory_space<vmem>>, %arg5: memref<1x8x128xf32, #tpu.memory_space<vmem>>, %arg6: memref<8x13xf32, #tpu.memory_space<vmem>>, %arg7: memref<8x13xf32, #tpu.memory_space<vmem>>) attributes {dimension_semantics = [#tpu.dimension_semantics<parallel>, #tpu.dimension_semantics<arbitrary>], iteration_bounds = array<i64: 2, 1>, scalar_prefetch = 0 : i64, scratch_operands = 2 : i64, tpu.core_type = #tpu.core_type<tc>, window_params = [{transform_indices = @transform_0, window_bounds = array<i64: 8, 65>}, {transform_indices = @transform_1, window_bounds = array<i64: 8, 65>}, {transform_indices = @transform_2, window_bounds = array<i64: 1, 8, 128>}, {transform_indices = @transform_3, window_bounds = array<i64: 1, 8, 128>}]} {
    %c0_i32 = arith.constant 0 : i32
    %0 = arith.cmpi eq, %arg1, %c0_i32 : i32
    %1 = arith.extui %0 : i1 to i32
    %c0_i32_0 = arith.constant 0 : i32
    %2 = arith.cmpi ne, %1, %c0_i32_0 : i32
    scf.if %2 {
      %cst_17 = arith.constant 0.000000e+00 : f32
      %34 = vector.broadcast %cst_17 : f32 to vector<8x13xf32>
      %c0_18 = arith.constant 0 : index
      %c0_19 = arith.constant 0 : index
      %35 = vector.load %arg6[%c0_18, %c0_19] : memref<8x13xf32, #tpu.memory_space<vmem>>, vector<8x13xf32>
      tpu.vector_store %arg6[%c0_18, %c0_19], %34 {strides = array<i32>} : memref<8x13xf32, #tpu.memory_space<vmem>>, vector<8x13xf32>,
      %cst_20 = arith.constant 0.000000e+00 : f32
      %36 = vector.broadcast %cst_20 : f32 to vector<8x13xf32>
      %c0_21 = arith.constant 0 : index
      %c0_22 = arith.constant 0 : index
      %37 = vector.load %arg7[%c0_21, %c0_22] : memref<8x13xf32, #tpu.memory_space<vmem>>, vector<8x13xf32>
      tpu.vector_store %arg7[%c0_21, %c0_22], %36 {strides = array<i32>} : memref<8x13xf32, #tpu.memory_space<vmem>>, vector<8x13xf32>,
    } else {
    }
    %c0 = arith.constant 0 : index
    %c0_1 = arith.constant 0 : index
    %3 = vector.load %arg2[%c0, %c0_1] : memref<8x65xf32, #tpu.memory_space<vmem>>, vector<8x65xf32>
    %c0_2 = arith.constant 0 : index
    %c0_3 = arith.constant 0 : index
    %4 = vector.load %arg3[%c0_2, %c0_3] : memref<8x65xf32, #tpu.memory_space<vmem>>, vector<8x65xf32>
    %5 = vector.extract_strided_slice %3 {offsets = [0, 0], sizes = [8, 13], strides = [1, 1]} : vector<8x65xf32> to vector<8x13xf32>
    %6 = vector.extract_strided_slice %4 {offsets = [0, 0], sizes = [8, 13], strides = [1, 1]} : vector<8x65xf32> to vector<8x13xf32>
    %7 = vector.extract_strided_slice %3 {offsets = [0, 52], sizes = [8, 13], strides = [1, 1]} : vector<8x65xf32> to vector<8x13xf32>
    %8 = vector.extract_strided_slice %4 {offsets = [0, 52], sizes = [8, 13], strides = [1, 1]} : vector<8x65xf32> to vector<8x13xf32>
    %9 = math.log %5 : vector<8x13xf32>
    %cst = arith.constant -1.000000e+02 : f32
    %10 = vector.broadcast %cst : f32 to vector<8x13xf32>
    %11 = arith.maximumf %9, %10 : vector<8x13xf32>
    %cst_4 = arith.constant 0.000000e+00 : f32
    %12 = vector.broadcast %cst_4 : f32 to vector<8x13xf32>
    %13 = arith.subf %12, %5 : vector<8x13xf32>
    %14 = math.log1p %13 : vector<8x13xf32>
    %cst_5 = arith.constant -1.000000e+02 : f32
    %15 = vector.broadcast %cst_5 : f32 to vector<8x13xf32>
    %16 = arith.maximumf %14, %15 : vector<8x13xf32>
    %17 = arith.subf %11, %16 : vector<8x13xf32>
    %18 = arith.mulf %6, %17 : vector<8x13xf32>
    %19 = arith.addf %18, %16 : vector<8x13xf32>
    %cst_6 = arith.constant 0.000000e+00 : f32
    %20 = vector.broadcast %cst_6 : f32 to vector<8x13xf32>
    %21 = arith.subf %20, %19 : vector<8x13xf32>
    %22 = arith.mulf %7, %6 : vector<8x13xf32>
    %23 = arith.subf %22, %8 : vector<8x13xf32>
    %24 = arith.mulf %23, %23 : vector<8x13xf32>
    %c0_7 = arith.constant 0 : index
    %c0_8 = arith.constant 0 : index
    %25 = vector.load %arg6[%c0_7, %c0_8] : memref<8x13xf32, #tpu.memory_space<vmem>>, vector<8x13xf32>
    %26 = arith.addf %25, %21 : vector<8x13xf32>
    %c0_9 = arith.constant 0 : index
    %c0_10 = arith.constant 0 : index
    %27 = vector.load %arg6[%c0_9, %c0_10] : memref<8x13xf32, #tpu.memory_space<vmem>>, vector<8x13xf32>
    tpu.vector_store %arg6[%c0_9, %c0_10], %26 {strides = array<i32>} : memref<8x13xf32, #tpu.memory_space<vmem>>, vector<8x13xf32>,
    %c0_11 = arith.constant 0 : index
    %c0_12 = arith.constant 0 : index
    %28 = vector.load %arg7[%c0_11, %c0_12] : memref<8x13xf32, #tpu.memory_space<vmem>>, vector<8x13xf32>
    %29 = arith.addf %28, %24 : vector<8x13xf32>
    %c0_13 = arith.constant 0 : index
    %c0_14 = arith.constant 0 : index
    %30 = vector.load %arg7[%c0_13, %c0_14] : memref<8x13xf32, #tpu.memory_space<vmem>>, vector<8x13xf32>
    tpu.vector_store %arg7[%c0_13, %c0_14], %29 {strides = array<i32>} : memref<8x13xf32, #tpu.memory_space<vmem>>, vector<8x13xf32>,
    %c0_i32_15 = arith.constant 0 : i32
    %31 = arith.cmpi eq, %arg1, %c0_i32_15 : i32
    %32 = arith.extui %31 : i1 to i32
    %c0_i32_16 = arith.constant 0 : i32
    %33 = arith.cmpi ne, %32, %c0_i32_16 : i32
    scf.if %33 {
      %c0_17 = arith.constant 0 : index
      %c0_18 = arith.constant 0 : index
      %34 = vector.load %arg6[%c0_17, %c0_18] : memref<8x13xf32, #tpu.memory_space<vmem>>, vector<8x13xf32>
      %35 = vector.shape_cast %34 : vector<8x13xf32> to vector<1x8x13xf32>
      %cst_19 = arith.constant dense<0.000000e+00> : vector<1xf32>
      %36 = vector.multi_reduction <add>, %35, %cst_19 [1, 2] : vector<1x8x13xf32> to vector<1xf32>
      %37 = vector.shape_cast %36 : vector<1xf32> to vector<1x1x1xf32>
      %38 = vector.extract %37[0, 0, 0] : f32 from vector<1x1x1xf32>
      %39 = vector.broadcast %38 : f32 to vector<1x1xf32>
      %40 = vector.extract %39[0, 0] : f32 from vector<1x1xf32>
      %c0_20 = arith.constant 0 : index
      %c0_21 = arith.constant 0 : index
      %41 = vector.load %arg7[%c0_20, %c0_21] : memref<8x13xf32, #tpu.memory_space<vmem>>, vector<8x13xf32>
      %42 = vector.shape_cast %41 : vector<8x13xf32> to vector<1x8x13xf32>
      %cst_22 = arith.constant dense<0.000000e+00> : vector<1xf32>
      %43 = vector.multi_reduction <add>, %42, %cst_22 [1, 2] : vector<1x8x13xf32> to vector<1xf32>
      %44 = vector.shape_cast %43 : vector<1xf32> to vector<1x1x1xf32>
      %45 = vector.extract %44[0, 0, 0] : f32 from vector<1x1x1xf32>
      %46 = vector.broadcast %45 : f32 to vector<1x1xf32>
      %47 = vector.extract %46[0, 0] : f32 from vector<1x1xf32>
      %48 = vector.broadcast %40 : f32 to vector<1x8x128xf32>
      %c0_23 = arith.constant 0 : index
      %c0_24 = arith.constant 0 : index
      %c0_25 = arith.constant 0 : index
      %49 = vector.load %arg4[%c0_23, %c0_24, %c0_25] : memref<1x8x128xf32, #tpu.memory_space<vmem>>, vector<1x8x128xf32>
      tpu.vector_store %arg4[%c0_23, %c0_24, %c0_25], %48 {strides = array<i32>} : memref<1x8x128xf32, #tpu.memory_space<vmem>>, vector<1x8x128xf32>,
      %50 = vector.broadcast %47 : f32 to vector<1x8x128xf32>
      %c0_26 = arith.constant 0 : index
      %c0_27 = arith.constant 0 : index
      %c0_28 = arith.constant 0 : index
      %51 = vector.load %arg5[%c0_26, %c0_27, %c0_28] : memref<1x8x128xf32, #tpu.memory_space<vmem>>, vector<1x8x128xf32>
      tpu.vector_store %arg5[%c0_26, %c0_27, %c0_28], %50 {strides = array<i32>} : memref<1x8x128xf32, #tpu.memory_space<vmem>>, vector<1x8x128xf32>,
    } else {
    }
    return
  }
  func.func @transform_0(%arg0: i32, %arg1: i32) -> (i32, i32) {
    %c1_i32 = arith.constant 1 : i32
    %0 = arith.muli %arg0, %c1_i32 : i32
    %1 = arith.addi %0, %arg1 : i32
    %c0_i32 = arith.constant 0 : i32
    %c0_i32_0 = arith.constant 0 : i32
    return %1, %c0_i32 : i32, i32
  }
  func.func @transform_1(%arg0: i32, %arg1: i32) -> (i32, i32) {
    %c1_i32 = arith.constant 1 : i32
    %0 = arith.muli %arg0, %c1_i32 : i32
    %1 = arith.addi %0, %arg1 : i32
    %c0_i32 = arith.constant 0 : i32
    %c0_i32_0 = arith.constant 0 : i32
    return %1, %c0_i32 : i32, i32
  }
  func.func @transform_2(%arg0: i32, %arg1: i32) -> (i32, i32, i32) {
    %c0_i32 = arith.constant 0 : i32
    %c0_i32_0 = arith.constant 0 : i32
    %c0_i32_1 = arith.constant 0 : i32
    return %arg0, %c0_i32, %c0_i32_0 : i32, i32, i32
  }
  func.func @transform_3(%arg0: i32, %arg1: i32) -> (i32, i32, i32) {
    %c0_i32 = arith.constant 0 : i32
    %c0_i32_0 = arith.constant 0 : i32
    %c0_i32_1 = arith.constant 0 : i32
    return %arg0, %c0_i32, %c0_i32_0 : i32, i32, i32
  }
}

</mosaic_0001>

<bundles_post_ra>
// kernel: tpu_custom_call.1
= control target key start
LH: loop header
LB: loop body
LE: loop exit
PB: predicated region body
PF: predicated region fallthrough
CT: control target
= control target key end

     0   :  { %9 = vsyncpa [#allocation5], 0  ;;  %s1063_s0 = inlined_call_operand.hbm [shape: f32[16,65], index: 0, kind: input, shape index: {}]   ;;  %s1064_s1 = inlined_call_operand.hbm [shape: f32[16,65], index: 1, kind: input, shape index: {}]   ;;  %s1065_s2 = inlined_call_operand.hbm [shape: f32[2,8,128], index: 2, kind: output, shape index: {0}]   ;;  %s1066_s3 = inlined_call_operand.hbm [shape: f32[2,8,128], index: 3, kind: output, shape index: {1}]  }
   0x1   :  { %11 = vsyncpa [#allocation5 + $0x1], 0 }
   0x2   :  { %12 = vsyncpa [#allocation8], 0 }
   0x3   :  { %14 = vsyncpa [#allocation8 + $0x1], 0 }
   0x4   :  { %15 = vsyncpa [#allocation6], 0 }
   0x5   :  { %17 = vsyncpa [#allocation6 + $0x1], 0 }
   0x6   :  { %18 = vsyncpa [#allocation11], 0 }
   0x7   :  { %20 = vsyncpa [#allocation11 + $0x1], 0  ;;  %s804_s12 = smov 0   ;;  %s806_s13 = smov 0  }
   0x8   :  { %s808_s14 = smov 0   ;;  %s810_s15 = smov 0  }
   0x9   :  { %s812_s16 = smov 0   ;;  %s814_s17 = smov 0  }
   0xa LB: > { %s495_s18 = sadd.s32 4294967295, %s775_s17   ;;  %s496_s19 = sadd.s32 4294967294, %s775_s17   ;;  %s775_s17 = sphi %s814_s17, %s26_s17   ;;  %s771_s16 = sphi %s812_s16, %s1086_s16   ;;  %s767_s15 = sphi %s810_s15, %s1085_s15   ;;  %s763_s14 = sphi %s808_s14, %s1084_s14   ;;  %s759_s13 = sphi %s806_s13, %s1083_s13   ;;  %s755_s12 = sphi %s804_s12, %s1082_s12  }
   0xb   : > { %s38_s20 = sadd.s32 1, %s771_s16  ;;  %s47_s21 = sadd.s32 1, %s763_s14 }
   0xc   : > { %p40_p0 = scmp.ge.s32.totalorder %s38_s20, 2  ;;  %p54_p1 = scmp.ne.s32.totalorder %s763_s14, %s759_s13 }
   0xd   : > { %p55_p2 = scmp.eq.s32.totalorder %s775_s17, 0  ;;  %p60_p3 = scmp.ne.s32.totalorder %s759_s13, %s755_s12 }
   0xe   : > { %s1088_s20 = smov (%p40_p0, %s38_s20), 0  ;;  %p61_p5 = scmp.eq.s32.totalorder %s495_s18, 0 }
   0xf   : > { %p845_p4 = por %p55_p2, %p54_p1  ;;  %s44_s23 = ssub.s32 %s771_s16, %s1088_s20 }
  0x10   : > { %p112_p6 = scmp.eq.s32.totalorder %s495_s18, 1  ;;  %p45_p7 = scmp.eq.s32.totalorder %s44_s23, 0 }
  0x11   : > { %p851_p8 = por %p61_p5, %p60_p3  ;;  %p118_p10 = scmp.eq.s32.totalorder %s496_s19, 1 }
  0x12   : > { %p855_p9 = por %p112_p6, %p54_p1  ;;  %p540_p13 = scmp.lt.s32.totalorder %s775_s17, 2 }
  0x13   : > { %s1070_s24 = scalar_select %p851_p8, 1, 0 }
  0x14   : > { %s1071_s25 = scalar_select %p855_p9, 1, 0 }
  0x15   : > { %s860_s26 = scalar_select %p45_p7, %s763_s14, %s47_s21  }
  0x16   : > { %p862_p11 = por %p118_p10, %p60_p3  ;;  %s869_s28 = sand.u32 1, %s763_s14  }
  0x17   : > { %s499_s29 = sshll.u32 %s869_s28, 3  ;;  %s500_s30 = sshll.u32 %s771_s16, 7 }
  0x18   : > { %s1072_s27 = scalar_select %p862_p11, 1, 0 }
  0x19   : > { %s878_s6 = scalar_lea.hbm %s1063_s0, %s500_s30  ;;  %s168_s7 = scalar_lea.vmem [#allocation4], %s499_s29 }
  0x1a   : > { %s176_s8 = sshll.u32 %s168_s7, 4  ;;  %p886_p0 = pnand %p540_p13, %p845_p4  ;;  %s882_s8 = int_to_ptr.vmem [resolvable:$true] %s176_s8 }
  0x1b   : > { %s165_s10 = scalar_lea.sflag [#allocation5], %s869_s28  ;;  %s597_s11 = scalar_lea.hbm %s878_s6, 128 }
  0x1c   : > { %p598_p3 = scmp.ne.s32.totalorder %s878_s6, %s597_s11  ;;  %p599_p5 = pneg %p886_p0 }
  0x1d   : > { %s602_s21 = scalar_lea.hbm %s1063_s0, 256  ;;  %p603_p4 = scmp.lt.u32.totalorder %s878_s6, %s1063_s0 }
  0x1e   : > { %p600_p6 = pnand %p599_p5, %p598_p3  ;;  %p604_p10 = scmp.lt.u32.totalorder %s602_s21, %s597_s11 }
  0x1f   : > { %p606_p12 = scmp.lt.u32.totalorder %s597_s11, %s878_s6 }
  0x20   : > { %p601_p7 = pneg %p600_p6  ;;  %p605_p13 = por %p604_p10, %p603_p4 }
  0x22   : > { %p607_p1 = por %p606_p12, %p605_p13 }
  0x24   : > { %p608_p2 = pnand %p607_p1, %p601_p7 }
  0x26   : > { %611 = shalt.err (!%p608_p2)
}
  0x27   : > { %s612_s4 = scalar_lea.vmem %s882_s8, 128  ;;  %s777_s5 = smov [#allocation4]  }
  0x28   : > { %p613_p3 = scmp.ne.s32.totalorder %s882_s8, %s612_s4  ;;  %s617_s7 = sshll.u32 %s777_s5, 4  ;;  %s618_s7 = int_to_ptr.vmem [resolvable:$false] %s617_s7 }
  0x29   : > { %s619_s18 = scalar_lea.vmem %s618_s7, 256  ;;  %p620_p9 = scmp.lt.s32.totalorder %s882_s8, %s618_s7 }
  0x2a   : > { %p615_p6 = pnand %p613_p3, %p599_p5  ;;  %p621_p4 = scmp.lt.s32.totalorder %s619_s18, %s612_s4 }
  0x2c   : > { %p616_p11 = pneg %p615_p6  ;;  %p622_p10 = por %p621_p4, %p620_p9 }
  0x2e   : > { %p623_p12 = pnand %p622_p10, %p616_p11 }
  0x30   : > { %626 = shalt.err (!%p623_p12)
}
  0x31   : > { %529 = dma.hbm_to_vmem [thread:$0]  (!%p886_p0), %s878_s6, 128, %s882_s8, %s165_s10  }
  0x32   : > { %p1074_p1 = scmp.lt.s32.totalorder %s775_s17, 3  ;;  %p1075_p2 = scmp.ge.s32.totalorder %s775_s17, 1 }
  0x33   : > { %s931_s22 = scalar_lea.hbm %s1064_s1, %s500_s30  ;;  %s187_s23 = scalar_lea.vmem [#allocation7], %s499_s29 }
  0x34   : > { %p922_p7 = pnand %p1075_p2, %p1074_p1  ;;  %s195_s4 = sshll.u32 %s187_s23, 4  ;;  %s196_s4 = int_to_ptr.vmem [resolvable:$true] %s195_s4 }
  0x35   : > { %s184_s6 = scalar_lea.sflag [#allocation8], %s869_s28  ;;  %s627_s8 = scalar_lea.hbm %s931_s22, 128 }
  0x36   : > { %s1076_s11 = scalar_select %p922_p7, 1, 0 }
  0x37   : > { %p628_p9 = scmp.ne.s32.totalorder %s931_s22, %s627_s8  ;;  %s632_s30 = scalar_lea.hbm %s1064_s1, 256 }
  0x38   : > { %p633_p3 = scmp.lt.u32.totalorder %s931_s22, %s1064_s1  ;;  %p634_p6 = scmp.lt.u32.totalorder %s632_s30, %s627_s8 }
  0x39   : > { %p630_p11 = pnand %p628_p9, %p599_p5  ;;  %p636_p10 = scmp.lt.u32.totalorder %s627_s8, %s931_s22 }
  0x3a   : > { %p635_p4 = por %p634_p6, %p633_p3 }
  0x3b   : > { %p631_p13 = pneg %p630_p11 }
  0x3c   : > { %p637_p12 = por %p636_p10, %p635_p4 }
  0x3e   : > { %p638_p1 = pnand %p637_p12, %p631_p13 }
  0x40   : > { %641 = shalt.err (!%p638_p1)
}
  0x41   : > { %s642_s28 = scalar_lea.vmem %s196_s4, 128  ;;  %s778_s29 = smov [#allocation7]  }
  0x42   : > { %p643_p2 = scmp.ne.s32.totalorder %s196_s4, %s642_s28  ;;  %s647_s19 = sshll.u32 %s778_s29, 4  ;;  %s648_s19 = int_to_ptr.vmem [resolvable:$false] %s647_s19 }
  0x43   : > { %s649_s21 = scalar_lea.vmem %s648_s19, 256  ;;  %p650_p8 = scmp.lt.s32.totalorder %s196_s4, %s648_s19 }
  0x44   : > { %p645_p9 = pnand %p643_p2, %p599_p5  ;;  %p651_p7 = scmp.lt.s32.totalorder %s649_s21, %s642_s28 }
  0x46   : > { %p646_p11 = pneg %p645_p9  ;;  %p652_p3 = por %p651_p7, %p650_p8 }
  0x48   : > { %p653_p6 = pnand %p652_p3, %p646_p11 }
  0x4a   : > { %656 = shalt.err (!%p653_p6)
}
  0x4b   : > { %532 = dma.hbm_to_vmem [thread:$0]  (!%p886_p0), %s931_s22, 128, %s196_s4, %s184_s6  }
  0x4c   : > { %p1077_p13 = scmp.ne.s32.totalorder %s1076_s11, 0 }
  0x4d   : > { %s958_s23 = sand.u32 (!%p1077_p13), 1, %s759_s13   ;;  %p1078_p8 = scmp.ne.s32.totalorder (!%p1077_p13), %s1070_s24, 0 }
  0x4e   : > { %204 = sbr.rel (%p1077_p13) target bundleno = 555 (0x22b), region = 28  ;;  %s961_s8 = sshll.u32 (!%p1077_p13), %s958_s23, 3 }
  0x4f   : > { %s207_s10 = scalar_lea.sflag (!%p1077_p13), [#allocation5], %s958_s23  ;;  %s210_s5 = scalar_lea.vmem (!%p1077_p13), [#allocation4], %s961_s8 }
  0x55   : > { %738 = dma.done.wait (%p1078_p8), %s207_s10, 128  }
  0x56   : > { %740 = vsyncadd (%p1078_p8), %s207_s10, 4294967168  ;;  %s216_s9 = scalar_lea.sflag [#allocation8], %s958_s23  ;;  %s219_s11 = scalar_lea.vmem [#allocation7], %s961_s8 }
  0x57   : > { %742 = dma.done.wait (%p1078_p8), %s216_s9, 128  }
  0x58   : > { %744 = vsyncadd (%p1078_p8), %s216_s9, 4294967168  ;;  %vm258_vm0 = vcmask 105472   ;;  %v779_v0 = vmov 0.0   ;;  %v262_v1 = vld [vmem:[%s219_s11] sm:$0xff]  ;;  %v261_v2 = vld [vmem:[%s210_s5] sm:$0xff]  ;;  %s780_s22 = smov 52  }
  0x59   : > { %259 = vst.msk [vmem:[#allocation2] sm:$0xff] %vm258_vm0, %v779_v0  ;;  %260 = vst.msk [vmem:[#allocation3] sm:$0xff] %vm258_vm0, %v779_v0  ;;  %282 = vrot.lane.b32.xlu0 %v262_v1, %s780_s22  ;;  %593 = vlog2.f32 %v261_v2  ;;  %v266_v3 = vsub.f32 0.0, %v261_v2  ;;  %s781_s24 = smov 76   ;;  %s244_s6 = scalar_lea.vmem [#allocation9], %s961_s8 }
  0x5a   : > { %s510_s30 = sshll.u32 %s767_s15, 7  ;;  %s347_s29 = sshll.u32 %s244_s6, 4  ;;  %s348_s29 = int_to_ptr.vmem [resolvable:$true] %s347_s29 }
  0x5b   : > { %v267_v4 = vadd.f32 1.0, %v266_v3  ;;  %v270_v5 = vmul.f32 -0.5, %v266_v3  ;;  %v273_v8 = vand.u32 2147483647, %v266_v3  ;;  %s988_s28 = scalar_lea.hbm %s1065_s2, %s510_s30  ;;  %s329_s19 = scalar_lea.sflag [#allocation6], %s958_s23 }
  0x5c   : > { %s657_s21 = scalar_lea.vmem %s348_s29, 128  ;;  %p1079_p5 = scmp.ne.s32.totalorder %s1071_s25, 0 }
  0x5d   : > { %595 = vlog2.f32 %v267_v4  ;;  %v271_v6 = vadd.f32 1.0, %v270_v5  ;;  %vm274_vm1 = vcmp.lt.f32.partialorder %v273_v8, 0.0004427343  ;;  %p658_p0 = scmp.ne.s32.totalorder %s348_s29, %s657_s21  ;;  %s782_s10 = smov [#allocation9]  }
  0x5e   : > { %s661_s5 = sshll.u32 %s782_s10, 4  ;;  %s662_s5 = int_to_ptr.vmem [resolvable:$false] %s661_s5 }
  0x5f   : > { %v272_v10 = vmul.f32 %v271_v6, %v266_v3  ;;  %p659_p7 = pnand %p658_p0, %p1079_p5  ;;  %s663_s9 = scalar_lea.vmem %s662_s5, 256 }
  0x60   : > { %v288_v19 = vld [vmem:[#allocation2] sm:$0xff]  ;;  %v292_v28 = vld [vmem:[#allocation3] sm:$0xff]  ;;  %p664_p10 = scmp.lt.s32.totalorder %s348_s29, %s662_s5  ;;  %p665_p12 = scmp.lt.s32.totalorder %s663_s9, %s657_s21 }
  0x61   : > { %p660_p4 = pneg %p659_p7 }
  0x62   : > { %p666_p1 = por %p665_p12, %p664_p10 }
  0x63   : > { %v594_v7 = vpop.eup %593 }
  0x64   : > { %v264_v9 = vmul.f32 0.6931472, %v594_v7  ;;  %p667_p2 = pnand %p666_p1, %p660_p4 }
  0x66   : > { %v265_v13 = vmax.f32 %v264_v9, -100.0 }
  0x67   : > { %v596_v11 = vpop.eup %595 }
  0x68   : > { %v269_v12 = vmul.f32 0.6931472, %v596_v11 }
  0x6a   : > { %v275_v14 = vsel %vm274_vm1, %v272_v10, %v269_v12 }
  0x6b   : > { %v276_v15 = vmax.f32 %v275_v14, -100.0 }
  0x6d   : > { %v277_v16 = vsub.f32 %v265_v13, %v276_v15 }
  0x6f   : > { %v278_v17 = vmul.f32 %v277_v16, %v262_v1 }
  0x71   : > { %v279_v18 = vadd.f32 %v278_v17, %v276_v15 }
  0x73   : > { %v280_v20 = vsub.f32 0.0, %v279_v18 }
  0x75   : > { %v289_v21 = vadd.f32 %v288_v19, %v280_v20 }
  0x77   : > { %291 = vst.msk [vmem:[#allocation2] sm:$0xff] %vm258_vm0, %v289_v21 }
  0x7e   : > { %v302_v22 = vld [vmem:[#allocation2] sm:$0xff] }
  0x7f   : > { %v303_v23 = vsel %vm258_vm0, %v302_v22, 0.0 }
  0x80   : > { %304 = vadd.xlane.f32.xlu1 %v303_v23 }
  0xcb   : > { %v283_v24 = vpop.permute.xlu0 %282 }
  0xcc   : > { %v285_v25 = vmul.f32 %v283_v24, %v261_v2 }
  0xce   : > { %v286_v26 = vsub.f32 %v285_v25, %v262_v1 }
  0xd0   : > { %v287_v27 = vmul.f32 %v286_v26, %v286_v26 }
  0xd2   : > { %294 = vrot.lane.b32.xlu0 %v287_v27, %s781_s24 }
 0x10d   : > { %v305_v33 = vpop.xlane.xlu1 %304 }
 0x10e   : > { %v306_v34 = vrot.slane %v305_v33, 4 }
 0x110   : > { %v307_v35 = vadd.f32 %v306_v34, %v305_v33 }
 0x112   : > { %v308_v36 = vrot.slane %v307_v35, 2 }
 0x114   : > { %v309_v37 = vadd.f32 %v308_v36, %v307_v35 }
 0x116   : > { %v310_v38 = vrot.slane %v309_v37, 1 }
 0x118   : > { %v311_v39 = vadd.f32 %v310_v38, %v309_v37 }
 0x11a   : > { %514 = vpush %v311_v39 }
 0x144   : > { %v295_v29 = vpop.permute.xlu0 %294 }
 0x145   : > { %v297_v30 = vadd.f32 %v295_v29, %v292_v28 }
 0x147   : > { %298 = vst.msk [vmem:[#allocation3] sm:$0xff] %vm258_vm0, %v297_v30 }
 0x14b   : > { %s515_s4 = spop %514 }
 0x14c   : > { %v324_v40 = vstv %s515_s4 }
 0x14d   : > { %325 = vst [vmem:[%s244_s6] sm:$0xff] %v324_v40 }
 0x14e   : > { %v313_v31 = vld [vmem:[#allocation3] sm:$0xff] }
 0x14f   : > { %v314_v32 = vsel %vm258_vm0, %v313_v31, 0.0 }
 0x150   : > { %315 = vadd.xlane.f32.xlu1 %v314_v32 }
 0x151   : > { %670 = shalt.err (!%p667_p2)
}
 0x152   : > { %s671_s11 = scalar_lea.hbm %s988_s28, 128  ;;  %s675_s4 = scalar_lea.hbm %s1065_s2, 256 }
 0x153   : > { %p672_p9 = scmp.ne.s32.totalorder %s988_s28, %s671_s11  ;;  %p676_p6 = scmp.lt.u32.totalorder %s988_s28, %s1065_s2 }
 0x154   : > { %p677_p13 = scmp.lt.u32.totalorder %s675_s4, %s671_s11  ;;  %p679_p0 = scmp.lt.u32.totalorder %s671_s11, %s988_s28 }
 0x155   : > { %p673_p11 = pnand %p672_p9, %p1079_p5 }
 0x156   : > { %p678_p8 = por %p677_p13, %p676_p6 }
 0x157   : > { %p674_p3 = pneg %p673_p11 }
 0x158   : > { %p680_p7 = por %p679_p0, %p678_p8 }
 0x15a   : > { %p681_p4 = pnand %p680_p7, %p674_p3 }
 0x15c   : > { %684 = shalt.err (!%p681_p4)
}
 0x15d   : > { %522 = dma.vmem_to_hbm [thread:$0]  (%p1079_p5), %s348_s29, 128, %s988_s28, %s329_s19  }
 0x15e   : > { %s251_s18 = scalar_lea.vmem [#allocation10], %s961_s8  ;;  %s1016_s19 = scalar_lea.hbm %s1066_s3, %s510_s30 }
 0x15f   : > { %s360_s21 = sshll.u32 %s251_s18, 4  ;;  %s334_s5 = scalar_lea.sflag [#allocation11], %s958_s23  ;;  %s1009_s21 = int_to_ptr.vmem [resolvable:$true] %s360_s21 }
 0x160   : > { %s685_s9 = scalar_lea.vmem %s1009_s21, 128  ;;  %s783_s8 = smov [#allocation10]  }
 0x161   : > { %p686_p10 = scmp.ne.s32.totalorder %s1009_s21, %s685_s9  ;;  %s689_s11 = sshll.u32 %s783_s8, 4  ;;  %s690_s11 = int_to_ptr.vmem [resolvable:$false] %s689_s11 }
 0x162   : > { %s691_s22 = scalar_lea.vmem %s690_s11, 256  ;;  %p692_p2 = scmp.lt.s32.totalorder %s1009_s21, %s690_s11 }
 0x163   : > { %p687_p12 = pnand %p686_p10, %p1079_p5  ;;  %p693_p9 = scmp.lt.s32.totalorder %s691_s22, %s685_s9 }
 0x165   : > { %p688_p1 = pneg %p687_p12  ;;  %p694_p11 = por %p693_p9, %p692_p2 }
 0x167   : > { %p695_p3 = pnand %p694_p11, %p688_p1 }
 0x1dd   : > { %v316_v41 = vpop.xlane.xlu1 %315 }
 0x1de   : > { %v317_v42 = vrot.slane %v316_v41, 4 }
 0x1e0   : > { %v318_v43 = vadd.f32 %v317_v42, %v316_v41 }
 0x1e2   : > { %v319_v44 = vrot.slane %v318_v43, 2 }
 0x1e4   : > { %v320_v45 = vadd.f32 %v319_v44, %v318_v43 }
 0x1e6   : > { %v321_v46 = vrot.slane %v320_v45, 1 }
 0x1e8   : > { %v322_v47 = vadd.f32 %v321_v46, %v320_v45 }
 0x1ea   : > { %516 = vpush %v322_v47 }
 0x21b   : > { %s517_s10 = spop %516 }
 0x21c   : > { %v326_v48 = vstv %s517_s10 }
 0x21d   : > { %327 = vst [vmem:[%s251_s18] sm:$0xff] %v326_v48 }
 0x21e   : > { %698 = shalt.err (!%p695_p3)
}
 0x21f   : > { %s699_s15 = scalar_lea.hbm %s1016_s19, 128  ;;  %s703_s24 = scalar_lea.hbm %s1066_s3, 256 }
 0x220   : > { %p700_p6 = scmp.ne.s32.totalorder %s1016_s19, %s699_s15  ;;  %p704_p0 = scmp.lt.u32.totalorder %s1016_s19, %s1066_s3 }
 0x221   : > { %p705_p7 = scmp.lt.u32.totalorder %s703_s24, %s699_s15  ;;  %p707_p10 = scmp.lt.u32.totalorder %s699_s15, %s1016_s19 }
 0x222   : > { %p701_p13 = pnand %p700_p6, %p1079_p5 }
 0x223   : > { %p706_p4 = por %p705_p7, %p704_p0 }
 0x224   : > { %p702_p8 = pneg %p701_p13 }
 0x225   : > { %p708_p12 = por %p707_p10, %p706_p4 }
 0x227   : > { %p709_p1 = pnand %p708_p12, %p702_p8 }
 0x229   : > { %712 = shalt.err (!%p709_p1)
}
 0x22a   : > { %523 = dma.vmem_to_hbm [thread:$0]  (%p1079_p5), %s1009_s21, 128, %s1016_s19, %s334_s5  }
 0x22b PF: > { %s372_s7 = sand.u32 1, %s755_s12   ;;  %p1080_p2 = scmp.ne.s32.totalorder %s1072_s27, 0 }
 0x22c   : > { %p1081_p9 = scmp.ge.s32.totalorder %s775_s17, 2  ;;  %s373_s18 = scalar_lea.sflag [#allocation6], %s372_s7 }
 0x22e   : > { %p534_p11 = pnand %p1081_p9, %p1080_p2 }
 0x230   : > { %746 = dma.done.wait (!%p534_p11), %s373_s18, 128  }
 0x231   : > { %748 = vsyncadd (!%p534_p11), %s373_s18, 4294967168  ;;  %s382_s10 = scalar_lea.sflag [#allocation11], %s372_s7 }
 0x232   : > { %750 = dma.done.wait (!%p534_p11), %s382_s10, 128  }
 0x233   : > { %752 = vsyncadd (!%p534_p11), %s382_s10, 4294967168  ;;  %s26_s17 = sadd.s32 1, %s775_s17   ;;  %s1082_s12 = smov %s759_s13 }
 0x234   : > { %p23_p3 = scmp.ge.s32.totalorder %s26_s17, 4   ;;  %s1083_s13 = smov %s763_s14 }
 0x235   : > { %s1084_s14 = smov %s860_s26  ;;  %s1085_s15 = smov %s771_s16 }
 0x236   : > { %s1086_s16 = smov %s1088_s20  ;;  %25 = sbr.rel (!%p23_p3) target bundleno = 10 (0xa), region = 111 }
 0x23d   :  { %387 = vsyncpa [#allocation5], 1 }
 0x23e   :  { %389 = vsyncpa [#allocation5 + $0x1], 1 }
 0x23f   :  { %390 = vsyncpa [#allocation8], 1 }
 0x240   :  { %392 = vsyncpa [#allocation8 + $0x1], 1 }
 0x241   :  { %393 = vsyncpa [#allocation6], 1 }
 0x242   :  { %395 = vsyncpa [#allocation6 + $0x1], 1 }
 0x243   :  { %396 = vsyncpa [#allocation11], 1 }
 0x244   :  { %398 = vsyncpa [#allocation11 + $0x1], 1 }

</bundles_post_ra>
